<compile_context>
chip_gen: v6e
topology: v6e:2x2x1
jax: 0.10.0
libtpu: 0.0.40
codegen_flags: <defaults>
</compile_context>

<pallas_src>
import jax
import jax.numpy as jnp
from jax.experimental import pallas as pl
from jax.experimental.pallas import tpu as pltpu

# ----------------------------- config ---------------------------------------
BATCH = 2
SEQ = 8
HIDDEN = 32
VOCAB = 256

PAD_ID = 0
CLS_ID = 101
SEP_ID = 102
MASK_ID = 103

_VMEM = pl.BlockSpec(memory_space=pltpu.MemorySpace.VMEM)
_SMEM = pl.BlockSpec(memory_space=pltpu.MemorySpace.SMEM)


# ----------------------------- fused Pallas kernel ---------------------------
def mtb_fused_kernel(labels_ref, rows_ref, y_ref,
                     x_ref, w1_ref, b1_ref, w2_ref, b2_ref, out_ref):
    """Fused MTB forward (both sentences stacked).

    labels_ref : VMEM i32 [M, 1]   MLM labels (-100 = ignore), M = 2*B*L.
    rows_ref   : VMEM i32 [4*B, 1] entity rows into the stacked logits, ordered
                                   [l_head(B), l_tail(B), r_head(B), r_tail(B)].
    y_ref      : VMEM f32 [B, 1]   MTB binary labels.
    x_ref      : VMEM f32 [M, H]   stacked masked-token embeddings (left, right).
    w1,b1,w2,b2: tiny MLM head parameters.
    out_ref    : SMEM f32 [1, 2]   (m_loss, r_loss).
    """
    m = x_ref.shape[0]               # 2*B*L
    v = w2_ref.shape[1]              # vocab
    bl = m // 2                      # tokens per side
    nb = y_ref.shape[0]              # batch size
    r4 = rows_ref.shape[0]           # 4*B

    # ---- tiny MLM head: logits = gelu(x @ W1 + b1) @ W2 + b2 (both sides) ---
    x = x_ref[...]
    h = jnp.dot(x, w1_ref[...], preferred_element_type=jnp.float32) + b1_ref[...]
    # TODO(synk): BertForMaskedLM uses exact (erf) GELU; the tanh approximation
    # is used here for its EUP-friendly lowering.
    h = jax.nn.gelu(h, approximate=True)
    logits = jnp.dot(h, w2_ref[...], preferred_element_type=jnp.float32) + b2_ref[...]

    # ---- masked-LM cross entropy, per side (mean over valid tokens), summed --
    lab_col = labels_ref[...]                                          # [M, 1]
    valid = (lab_col != -100).astype(jnp.float32)                      # [M, 1]
    vocab_iota = jax.lax.broadcasted_iota(jnp.int32, (m, v), 1)
    onehot = (vocab_iota == lab_col).astype(jnp.float32)               # [M, V]

    row_max = jnp.max(logits, axis=-1, keepdims=True)                  # [M, 1]
    lse = row_max + jnp.log(jnp.sum(jnp.exp(logits - row_max), axis=-1,
                                    keepdims=True))                    # [M, 1]
    lab_logit = jnp.sum(logits * onehot, axis=-1, keepdims=True)       # [M, 1]
    per_tok = (lse - lab_logit) * valid                                # [M, 1]

    # separate mean per side (matches loss_L + loss_R of the reference)
    row_iota = jax.lax.broadcasted_iota(jnp.int32, (m, 1), 0)
    left = (row_iota < bl).astype(jnp.float32)                         # [M, 1]
    num_l = jnp.sum(per_tok * left, keepdims=True)                     # [1, 1]
    den_l = jnp.sum(valid * left, keepdims=True)                       # [1, 1]
    num_r = jnp.sum(per_tok, keepdims=True) - num_l
    den_r = jnp.sum(valid, keepdims=True) - den_l
    loss_l = num_l * pl.reciprocal(jnp.maximum(den_l, 1.0), approx=True)
    loss_r = num_r * pl.reciprocal(jnp.maximum(den_r, 1.0), approx=True)
    out_ref[0, 0] = jnp.sum(loss_l + loss_r)

    # ---- entity-pair gather (one-hot MXU gather) + similarity + BCE ---------
    col_iota = jax.lax.broadcasted_iota(jnp.int32, (r4, m), 1)
    sel = (col_iota == rows_ref[...]).astype(jnp.float32)              # [4B, M]
    gathered = jnp.dot(sel, logits, preferred_element_type=jnp.float32)  # [4B, V]

    l_pair = gathered[:2 * nb]       # rows [l_head(B), l_tail(B)]
    r_pair = gathered[2 * nb:]       # rows [r_head(B), r_tail(B)]
    # sim_i = <cat(l_h,l_t)_i, cat(r_h,r_t)_i> = <l_h_i, r_h_i> + <l_t_i, r_t_i>
    s = jnp.sum(l_pair * r_pair, axis=-1, keepdims=True)               # [2B, 1]
    sim = s[:nb] + s[nb:]                                              # [B, 1]

    # numerically stable BCE-with-logits, mean over the batch
    y = y_ref[...]                                                     # [B, 1]
    bce = jnp.maximum(sim, 0.0) - sim * y + jnp.log1p(jnp.exp(-jnp.abs(sim)))
    out_ref[0, 1] = jnp.sum(bce) * (1.0 / nb)


def mtb_fused(labels_col, rows_col, y_col, x, w1, b1, w2, b2):
    out = pl.pallas_call(
        mtb_fused_kernel,
        out_shape=jax.ShapeDtypeStruct((1, 2), jnp.float32),
        in_specs=[_VMEM] * 8,
        out_specs=_SMEM,
    )(labels_col, rows_col, y_col, x, w1, b1, w2, b2)
    return out[0, 0], out[0, 1]


# ----------------------------- glue (plain JAX) ------------------------------
def init_params(key):
    k1, k2, k3, k4 = jax.random.split(key, 4)
    s = 0.02
    return {
        "tok_emb": s * jax.random.normal(k1, (VOCAB, HIDDEN), jnp.float32),
        "pos_emb": s * jax.random.normal(k2, (SEQ, HIDDEN), jnp.float32),
        "w1": s * jax.random.normal(k3, (HIDDEN, HIDDEN), jnp.float32),
        "b1": jnp.zeros((1, HIDDEN), jnp.float32),
        "w2": s * jax.random.normal(k4, (HIDDEN, VOCAB), jnp.float32),
        "b2": jnp.zeros((1, VOCAB), jnp.float32),
    }


def mask_tokens_jax(key, inputs, not_mask_pos):
    """Deterministic JAX re-implementation of mask_tokens (80/10/10)."""
    k1, k2, k3, k4 = jax.random.split(key, 4)
    labels = inputs
    prob = jnp.full(inputs.shape, 0.15, jnp.float32)
    special = (inputs == CLS_ID) | (inputs == SEP_ID)
    prob = jnp.where(special, 0.0, prob)
    prob = jnp.where(inputs == PAD_ID, 0.0, prob)
    masked = (jax.random.uniform(k1, inputs.shape) < prob) & (not_mask_pos == 0)
    labels = jnp.where(masked, labels, -100)
    replaced = (jax.random.uniform(k2, inputs.shape) < 0.8) & masked
    out = jnp.where(replaced, MASK_ID, inputs)
    rand_sel = (jax.random.uniform(k3, inputs.shape) < 0.5) & masked & ~replaced
    rand_words = jax.random.randint(k4, inputs.shape, 0, VOCAB, jnp.int32)
    out = jnp.where(rand_sel, rand_words, out)
    return out, labels


def mtb_forward(params, key, l_input, l_mask, l_ph, l_pt,
                r_input, r_mask, r_ph, r_pt, label):
    b, l = l_input.shape
    indice = jnp.arange(b)
    l_not_mask = (jnp.zeros((b, l), jnp.int32)
                  .at[indice, l_ph].set(1).at[indice, l_pt].set(1))
    r_not_mask = (jnp.zeros((b, l), jnp.int32)
                  .at[indice, r_ph].set(1).at[indice, r_pt].set(1))

    k_l, k_r = jax.random.split(key)
    m_l_input, m_l_labels = mask_tokens_jax(k_l, l_input, l_not_mask)
    m_r_input, m_r_labels = mask_tokens_jax(k_r, r_input, r_not_mask)

    # Token + position embeddings (plain-JAX gather); attention_mask is applied
    # multiplicatively on the embeddings.
    # TODO(synk): the full BERT self-attention encoder has no compact Pallas
    # equivalent here; this tiny synthetic MLM head stands in for it.
    def embed(input_ids, attn_mask):
        emb = params["tok_emb"][input_ids] + params["pos_emb"][None, :, :]
        emb = emb * attn_mask[..., None].astype(emb.dtype)
        return emb.reshape(b * l, HIDDEN)

    # Stack left and right sides -> one kernel invocation, weights DMA'd once.
    x = jnp.concatenate([embed(m_l_input, l_mask), embed(m_r_input, r_mask)], 0)
    labels_col = jnp.concatenate([m_l_labels.reshape(-1),
                                  m_r_labels.reshape(-1)], 0
                                 ).astype(jnp.int32).reshape(-1, 1)

    # Entity rows into the stacked [2*B*L, V] logits: [l_head, l_tail, r_head, r_tail].
    base_l = (indice * l).astype(jnp.int32)
    base_r = ((b + indice) * l).astype(jnp.int32)
    rows_col = jnp.concatenate([base_l + l_ph, base_l + l_pt,
                                base_r + r_ph, base_r + r_pt]
                               ).astype(jnp.int32).reshape(-1, 1)
    y_col = label.astype(jnp.float32).reshape(-1, 1)

    return mtb_fused(labels_col, rows_col, y_col, x,
                     params["w1"], params["b1"], params["w2"], params["b2"])


# ----------------------------- main ------------------------------------------
if __name__ == "__main__":
    root = jax.random.PRNGKey(0)
    k_param, k_data, k_mask = jax.random.split(root, 3)
    params = init_params(k_param)

    kd = jax.random.split(k_data, 8)

    def make_tokens(k):
        toks = jax.random.randint(k, (BATCH, SEQ), 1, VOCAB, jnp.int32)
        return toks.at[:, 0].set(CLS_ID).at[:, SEQ - 1].set(SEP_ID)

    l_input = make_tokens(kd[0])
    r_input = make_tokens(kd[1])
    l_mask = jnp.ones((BATCH, SEQ), jnp.int32)
    r_mask = jnp.ones((BATCH, SEQ), jnp.int32)
    l_ph = jax.random.randint(kd[2], (BATCH,), 1, SEQ - 1, jnp.int32)
    l_pt = jax.random.randint(kd[3], (BATCH,), 1, SEQ - 1, jnp.int32)
    r_ph = jax.random.randint(kd[4], (BATCH,), 1, SEQ - 1, jnp.int32)
    r_pt = jax.random.randint(kd[5], (BATCH,), 1, SEQ - 1, jnp.int32)
    label = jax.random.randint(kd[6], (BATCH,), 0, 2, jnp.int32)

    fwd = jax.jit(mtb_forward)
    m_loss, r_loss = fwd(params, k_mask, l_input, l_mask, l_ph, l_pt,
                         r_input, r_mask, r_ph, r_pt, label)
    jax.block_until_ready((m_loss, r_loss))
    assert jnp.isfinite(m_loss) and jnp.isfinite(r_loss)
    print("KERNEL_OK")
</pallas_src>

<mosaic_0001>
module attributes {stable_mosaic.version = 11 : i64} {
  func.func @mtb_fused_kernel(%arg0: memref<32x1xi32, #tpu.memory_space<vmem>>, %arg1: memref<8x1xi32, #tpu.memory_space<vmem>>, %arg2: memref<2x1xf32, #tpu.memory_space<vmem>>, %arg3: memref<32x32xf32, #tpu.memory_space<vmem>>, %arg4: memref<32x32xf32, #tpu.memory_space<vmem>>, %arg5: memref<1x32xf32, #tpu.memory_space<vmem>>, %arg6: memref<32x256xf32, #tpu.memory_space<vmem>>, %arg7: memref<1x256xf32, #tpu.memory_space<vmem>>, %arg8: memref<1x2xf32, #tpu.memory_space<smem>>) attributes {dimension_semantics = [], scalar_prefetch = 0 : i64, scratch_operands = 0 : i64, tpu.core_type = #tpu.core_type<tc>} {
    %c0 = arith.constant 0 : index
    %c0_0 = arith.constant 0 : index
    %0 = vector.load %arg3[%c0, %c0_0] : memref<32x32xf32, #tpu.memory_space<vmem>>, vector<32x32xf32>
    %c0_1 = arith.constant 0 : index
    %c0_2 = arith.constant 0 : index
    %1 = vector.load %arg4[%c0_1, %c0_2] : memref<32x32xf32, #tpu.memory_space<vmem>>, vector<32x32xf32>
    %cst = arith.constant dense<0.000000e+00> : vector<32x32xf32>
    %2 = tpu.matmul %0, %1, %cst {dimension_numbers = #tpu.dot_dimension_numbers<[1], [0], [0], [1], [0, 0, 1, 1], [], []>} : vector<32x32xf32>, vector<32x32xf32>, vector<32x32xf32> -> vector<32x32xf32>
    %c0_3 = arith.constant 0 : index
    %c0_4 = arith.constant 0 : index
    %3 = vector.load %arg5[%c0_3, %c0_4] : memref<1x32xf32, #tpu.memory_space<vmem>>, vector<1x32xf32>
    %4 = vector.broadcast %3 : vector<1x32xf32> to vector<32x32xf32>
    %5 = arith.addf %2, %4 : vector<32x32xf32>
    %6 = arith.mulf %5, %5 : vector<32x32xf32>
    %7 = arith.mulf %5, %6 : vector<32x32xf32>
    %cst_5 = arith.constant 4.471500e-02 : f32
    %8 = vector.broadcast %cst_5 : f32 to vector<32x32xf32>
    %9 = arith.mulf %8, %7 : vector<32x32xf32>
    %10 = arith.addf %5, %9 : vector<32x32xf32>
    %cst_6 = arith.constant 0.797884583 : f32
    %11 = vector.broadcast %cst_6 : f32 to vector<32x32xf32>
    %12 = arith.mulf %11, %10 : vector<32x32xf32>
    %13 = math.tanh %12 : vector<32x32xf32>
    %cst_7 = arith.constant 1.000000e+00 : f32
    %14 = vector.broadcast %cst_7 : f32 to vector<32x32xf32>
    %15 = arith.addf %14, %13 : vector<32x32xf32>
    %cst_8 = arith.constant 5.000000e-01 : f32
    %16 = vector.broadcast %cst_8 : f32 to vector<32x32xf32>
    %17 = arith.mulf %16, %15 : vector<32x32xf32>
    %18 = arith.mulf %5, %17 : vector<32x32xf32>
    %c0_9 = arith.constant 0 : index
    %c0_10 = arith.constant 0 : index
    %19 = vector.load %arg6[%c0_9, %c0_10] : memref<32x256xf32, #tpu.memory_space<vmem>>, vector<32x256xf32>
    %cst_11 = arith.constant dense<0.000000e+00> : vector<32x256xf32>
    %20 = tpu.matmul %18, %19, %cst_11 {dimension_numbers = #tpu.dot_dimension_numbers<[1], [0], [0], [1], [0, 0, 1, 1], [], []>} : vector<32x32xf32>, vector<32x256xf32>, vector<32x256xf32> -> vector<32x256xf32>
    %c0_12 = arith.constant 0 : index
    %c0_13 = arith.constant 0 : index
    %21 = vector.load %arg7[%c0_12, %c0_13] : memref<1x256xf32, #tpu.memory_space<vmem>>, vector<1x256xf32>
    %22 = vector.broadcast %21 : vector<1x256xf32> to vector<32x256xf32>
    %23 = arith.addf %20, %22 : vector<32x256xf32>
    %c0_14 = arith.constant 0 : index
    %c0_15 = arith.constant 0 : index
    %24 = vector.load %arg0[%c0_14, %c0_15] : memref<32x1xi32, #tpu.memory_space<vmem>>, vector<32x1xi32>
    %c-100_i32 = arith.constant -100 : i32
    %25 = vector.broadcast %c-100_i32 : i32 to vector<32x1xi32>
    %26 = arith.cmpi ne, %24, %25 : vector<32x1xi32>
    %27 = arith.extui %26 : vector<32x1xi1> to vector<32x1xi32>
    %28 = arith.sitofp %27 : vector<32x1xi32> to vector<32x1xf32>
    %29 = tpu.iota {dimensions = array<i32: 1>} : vector<32x256xi32>
    %30 = vector.broadcast %24 : vector<32x1xi32> to vector<32x256xi32>
    %31 = arith.cmpi eq, %29, %30 : vector<32x256xi32>
    %32 = arith.extui %31 : vector<32x256xi1> to vector<32x256xi32>
    %33 = arith.sitofp %32 : vector<32x256xi32> to vector<32x256xf32>
    %cst_16 = arith.constant dense<0xFF800000> : vector<32xf32>
    %34 = vector.multi_reduction <maximumf>, %23, %cst_16 [1] : vector<32x256xf32> to vector<32xf32>
    %35 = vector.shape_cast %34 : vector<32xf32> to vector<32x1xf32>
    %36 = vector.broadcast %35 : vector<32x1xf32> to vector<32x256xf32>
    %37 = arith.subf %23, %36 : vector<32x256xf32>
    %38 = math.exp %37 : vector<32x256xf32>
    %cst_17 = arith.constant dense<0.000000e+00> : vector<32xf32>
    %39 = vector.multi_reduction <add>, %38, %cst_17 [1] : vector<32x256xf32> to vector<32xf32>
    %40 = vector.shape_cast %39 : vector<32xf32> to vector<32x1xf32>
    %41 = math.log %40 : vector<32x1xf32>
    %42 = arith.addf %35, %41 : vector<32x1xf32>
    %43 = arith.mulf %23, %33 : vector<32x256xf32>
    %cst_18 = arith.constant dense<0.000000e+00> : vector<32xf32>
    %44 = vector.multi_reduction <add>, %43, %cst_18 [1] : vector<32x256xf32> to vector<32xf32>
    %45 = vector.shape_cast %44 : vector<32xf32> to vector<32x1xf32>
    %46 = arith.subf %42, %45 : vector<32x1xf32>
    %47 = arith.mulf %46, %28 : vector<32x1xf32>
    %48 = tpu.iota {dimensions = array<i32: 0>} : vector<32x1xi32>
    %c16_i32 = arith.constant 16 : i32
    %49 = vector.broadcast %c16_i32 : i32 to vector<32x1xi32>
    %50 = arith.cmpi slt, %48, %49 : vector<32x1xi32>
    %51 = arith.extui %50 : vector<32x1xi1> to vector<32x1xi32>
    %52 = arith.sitofp %51 : vector<32x1xi32> to vector<32x1xf32>
    %53 = arith.mulf %47, %52 : vector<32x1xf32>
    %54 = vector.shape_cast %53 : vector<32x1xf32> to vector<1x32x1xf32>
    %cst_19 = arith.constant dense<0.000000e+00> : vector<1xf32>
    %55 = vector.multi_reduction <add>, %54, %cst_19 [1, 2] : vector<1x32x1xf32> to vector<1xf32>
    %56 = vector.shape_cast %55 : vector<1xf32> to vector<1x1x1xf32>
    %57 = vector.extract %56[0, 0, 0] : f32 from vector<1x1x1xf32>
    %58 = vector.broadcast %57 : f32 to vector<1x1xf32>
    %59 = arith.mulf %28, %52 : vector<32x1xf32>
    %60 = vector.shape_cast %59 : vector<32x1xf32> to vector<1x32x1xf32>
    %cst_20 = arith.constant dense<0.000000e+00> : vector<1xf32>
    %61 = vector.multi_reduction <add>, %60, %cst_20 [1, 2] : vector<1x32x1xf32> to vector<1xf32>
    %62 = vector.shape_cast %61 : vector<1xf32> to vector<1x1x1xf32>
    %63 = vector.extract %62[0, 0, 0] : f32 from vector<1x1x1xf32>
    %64 = vector.broadcast %63 : f32 to vector<1x1xf32>
    %65 = vector.shape_cast %47 : vector<32x1xf32> to vector<1x32x1xf32>
    %cst_21 = arith.constant dense<0.000000e+00> : vector<1xf32>
    %66 = vector.multi_reduction <add>, %65, %cst_21 [1, 2] : vector<1x32x1xf32> to vector<1xf32>
    %67 = vector.shape_cast %66 : vector<1xf32> to vector<1x1x1xf32>
    %68 = vector.extract %67[0, 0, 0] : f32 from vector<1x1x1xf32>
    %69 = vector.broadcast %68 : f32 to vector<1x1xf32>
    %70 = arith.subf %69, %58 : vector<1x1xf32>
    %71 = vector.shape_cast %28 : vector<32x1xf32> to vector<1x32x1xf32>
    %cst_22 = arith.constant dense<0.000000e+00> : vector<1xf32>
    %72 = vector.multi_reduction <add>, %71, %cst_22 [1, 2] : vector<1x32x1xf32> to vector<1xf32>
    %73 = vector.shape_cast %72 : vector<1xf32> to vector<1x1x1xf32>
    %74 = vector.extract %73[0, 0, 0] : f32 from vector<1x1x1xf32>
    %75 = vector.broadcast %74 : f32 to vector<1x1xf32>
    %76 = arith.subf %75, %64 : vector<1x1xf32>
    %cst_23 = arith.constant 1.000000e+00 : f32
    %77 = vector.broadcast %cst_23 : f32 to vector<1x1xf32>
    %78 = arith.maximumf %64, %77 : vector<1x1xf32>
    %79 = tpu.reciprocal %78 {approx = true} : vector<1x1xf32> -> vector<1x1xf32>
    %80 = arith.mulf %58, %79 : vector<1x1xf32>
    %cst_24 = arith.constant 1.000000e+00 : f32
    %81 = vector.broadcast %cst_24 : f32 to vector<1x1xf32>
    %82 = arith.maximumf %76, %81 : vector<1x1xf32>
    %83 = tpu.reciprocal %82 {approx = true} : vector<1x1xf32> -> vector<1x1xf32>
    %84 = arith.mulf %70, %83 : vector<1x1xf32>
    %85 = arith.addf %80, %84 : vector<1x1xf32>
    %86 = vector.shape_cast %85 : vector<1x1xf32> to vector<1x1x1xf32>
    %cst_25 = arith.constant dense<0.000000e+00> : vector<1xf32>
    %87 = vector.multi_reduction <add>, %86, %cst_25 [1, 2] : vector<1x1x1xf32> to vector<1xf32>
    %88 = vector.shape_cast %87 : vector<1xf32> to vector<1x1x1xf32>
    %89 = vector.extract %88[0, 0, 0] : f32 from vector<1x1x1xf32>
    %c0_26 = arith.constant 0 : index
    %c0_27 = arith.constant 0 : index
    %90 = memref.load %arg8[%c0_26, %c0_27] : memref<1x2xf32, #tpu.memory_space<smem>>
    memref.store %89, %arg8[%c0_26, %c0_27] : memref<1x2xf32, #tpu.memory_space<smem>>
    %91 = tpu.iota {dimensions = array<i32: 1>} : vector<8x32xi32>
    %c0_28 = arith.constant 0 : index
    %c0_29 = arith.constant 0 : index
    %92 = vector.load %arg1[%c0_28, %c0_29] : memref<8x1xi32, #tpu.memory_space<vmem>>, vector<8x1xi32>
    %93 = vector.broadcast %92 : vector<8x1xi32> to vector<8x32xi32>
    %94 = arith.cmpi eq, %91, %93 : vector<8x32xi32>
    %95 = arith.extui %94 : vector<8x32xi1> to vector<8x32xi32>
    %96 = arith.sitofp %95 : vector<8x32xi32> to vector<8x32xf32>
    %cst_30 = arith.constant dense<0.000000e+00> : vector<8x256xf32>
    %97 = tpu.matmul %96, %23, %cst_30 {dimension_numbers = #tpu.dot_dimension_numbers<[1], [0], [0], [1], [0, 0, 1, 1], [], []>} : vector<8x32xf32>, vector<32x256xf32>, vector<8x256xf32> -> vector<8x256xf32>
    %98 = vector.extract_strided_slice %97 {offsets = [0, 0], sizes = [4, 256], strides = [1, 1]} : vector<8x256xf32> to vector<4x256xf32>
    %99 = vector.extract_strided_slice %97 {offsets = [4, 0], sizes = [4, 256], strides = [1, 1]} : vector<8x256xf32> to vector<4x256xf32>
    %100 = arith.mulf %98, %99 : vector<4x256xf32>
    %cst_31 = arith.constant dense<0.000000e+00> : vector<4xf32>
    %101 = vector.multi_reduction <add>, %100, %cst_31 [1] : vector<4x256xf32> to vector<4xf32>
    %102 = vector.shape_cast %101 : vector<4xf32> to vector<4x1xf32>
    %103 = vector.extract_strided_slice %102 {offsets = [0, 0], sizes = [2, 1], strides = [1, 1]} : vector<4x1xf32> to vector<2x1xf32>
    %104 = vector.extract_strided_slice %102 {offsets = [2, 0], sizes = [2, 1], strides = [1, 1]} : vector<4x1xf32> to vector<2x1xf32>
    %105 = arith.addf %103, %104 : vector<2x1xf32>
    %c0_32 = arith.constant 0 : index
    %c0_33 = arith.constant 0 : index
    %106 = vector.load %arg2[%c0_32, %c0_33] : memref<2x1xf32, #tpu.memory_space<vmem>>, vector<2x1xf32>
    %cst_34 = arith.constant 0.000000e+00 : f32
    %107 = vector.broadcast %cst_34 : f32 to vector<2x1xf32>
    %108 = arith.maximumf %105, %107 : vector<2x1xf32>
    %109 = arith.mulf %105, %106 : vector<2x1xf32>
    %110 = arith.subf %108, %109 : vector<2x1xf32>
    %111 = math.absf %105 : vector<2x1xf32>
    %cst_35 = arith.constant 0.000000e+00 : f32
    %112 = vector.broadcast %cst_35 : f32 to vector<2x1xf32>
    %113 = arith.subf %112, %111 : vector<2x1xf32>
    %114 = math.exp %113 : vector<2x1xf32>
    %115 = math.log1p %114 : vector<2x1xf32>
    %116 = arith.addf %110, %115 : vector<2x1xf32>
    %117 = vector.shape_cast %116 : vector<2x1xf32> to vector<1x2x1xf32>
    %cst_36 = arith.constant dense<0.000000e+00> : vector<1xf32>
    %118 = vector.multi_reduction <add>, %117, %cst_36 [1, 2] : vector<1x2x1xf32> to vector<1xf32>
    %119 = vector.shape_cast %118 : vector<1xf32> to vector<1x1x1xf32>
    %120 = vector.extract %119[0, 0, 0] : f32 from vector<1x1x1xf32>
    %cst_37 = arith.constant 5.000000e-01 : f32
    %121 = arith.mulf %120, %cst_37 : f32
    %c0_38 = arith.constant 0 : index
    %c1 = arith.constant 1 : index
    %122 = memref.load %arg8[%c0_38, %c1] : memref<1x2xf32, #tpu.memory_space<smem>>
    memref.store %121, %arg8[%c0_38, %c1] : memref<1x2xf32, #tpu.memory_space<smem>>
    return
  }
}

</mosaic_0001>

<bundles_post_ra>
// kernel: mtb_forward.1
= control target key start
LH: loop header
LB: loop body
LE: loop exit
PB: predicated region body
PF: predicated region fallthrough
CT: control target
= control target key end

     0   :  { %vm45_vm0 = vcmask 261120   ;;  %s1066_s0 = inlined_call_operand.vmem [shape: s32[32,1], index: 0, kind: input, shape index: {}]   ;;  %s1067_s1 = inlined_call_operand.vmem [shape: s32[8,1], index: 1, kind: input, shape index: {}]   ;;  %s1068_s2 = inlined_call_operand.vmem [shape: f32[2,1], index: 2, kind: input, shape index: {}]   ;;  %s1069_s3 = inlined_call_operand.vmem [shape: f32[32,32], index: 3, kind: input, shape index: {}]   ;;  %s1070_s4 = inlined_call_operand.vmem [shape: f32[32,32], index: 4, kind: input, shape index: {}]   ;;  %s1071_s5 = inlined_call_operand.vmem [shape: f32[1,32], index: 5, kind: input, shape index: {}]   ;;  %s1072_s6 = inlined_call_operand.vmem [shape: f32[32,256], index: 6, kind: input, shape index: {}]   ;;  %s1073_s7 = inlined_call_operand.vmem [shape: f32[1,256], index: 7, kind: input, shape index: {}]   ;;  %s1074_s8 = inlined_call_operand.vmem [shape: f32[1,2], index: 8, kind: output, shape index: {}]  }
   0x1   :  { %v37_v0 = vld [vmem:[%s1070_s4 + $0x18] sm:$0xff]  ;;  %v36_v1 = vld [vmem:[%s1070_s4 + $0x10] sm:$0xff]  ;;  %v30_v2 = vld [vmem:[%s1069_s3] sm:$0xff] }
   0x2   :  { %727 = vmatprep.subr.mxu0 %v37_v0  ;;  %v35_v3 = vld [vmem:[%s1070_s4 + $0x8] sm:$0xff]  ;;  %735 = vmatprep.mubr.msk.f32.mxu0 %vm45_vm0, %v30_v2 }
   0x3   :  { %728 = vmatpush3.msra.mxu0 %v37_v0 }
   0x4   :  { %13 = vsyncpa [#allocation3], 0  ;;  %729 = vmatprep.subr.mxu0 %v36_v1  ;;  %v34_v4 = vld [vmem:[%s1070_s4] sm:$0xff]  ;;  %v31_v5 = vld [vmem:[%s1069_s3 + $0x8] sm:$0xff]  ;;  %v812_v12 = vmov 0.0   ;;  %v813_v19 = vmov 0  }
   0x5   :  { %730 = vmatpush3.msra.mxu0 %v36_v1  ;;  %v32_v6 = vld [vmem:[%s1069_s3 + $0x10] sm:$0xff]  ;;  %v33_v7 = vld [vmem:[%s1069_s3 + $0x18] sm:$0xff]  ;;  %v184_v10 = vld [vmem:[%s1072_s6 + $0x28] sm:$0xff]  ;;  %275 = vmatprep.mubr.f32.mxu1 %v812_v12  ;;  %v189_v1 = vlaneseq  ;;  %vm464_vm14 = vcmask 7168   ;;  %vm639_vm15 = vcmask 1043456   ;;  %s687_s3 = sshll.u32 %s1074_s8, 4  ;;  %s688_s3 = int_to_ptr.vmem [resolvable:$true] %s687_s3 }
   0x6   :  { %731 = vmatprep.subr.mxu0 %v35_v3  ;;  %v186_v8 = vld [vmem:[%s1072_s6 + $0x38] sm:$0xff]  ;;  %v185_v9 = vld [vmem:[%s1072_s6 + $0x30] sm:$0xff]  ;;  %v183_v11 = vld [vmem:[%s1072_s6 + $0x20] sm:$0xff]  ;;  %757 = vset.pattern.permute.xlu1 %v813_v19  ;;  %s798_s9 = scalar_lea.vmem %s688_s3, 16  ;;  %p803_p1 = scmp.lt.s32.totalorder %s688_s3, %s688_s3 }
   0x7   :  { %732 = vmatpush3.msra.mxu0 %v35_v3  ;;  %235 = vmatprep.subr.mxu1 %v186_v8  ;;  %v182_v13 = vld [vmem:[%s1072_s6 + $0x18] sm:$0xff]  ;;  %v181_v14 = vld [vmem:[%s1072_s6 + $0x10] sm:$0xff]  ;;  %v180_v15 = vld [vmem:[%s1072_s6 + $0x8] sm:$0xff]  ;;  %v190_v2 = vshrl.u32 %v189_v1, 7  ;;  %p799_p0 = scmp.ne.s32.totalorder %s688_s3, %s798_s9  ;;  %p804_p2 = scmp.lt.s32.totalorder %s798_s9, %s798_s9 }
   0x8   :  { %733 = vmatprep.subr.mxu0 %v34_v4  ;;  %236 = vmatpush1.msra.mxu1 %v185_v9  ;;  %v179_v16 = vld [vmem:[%s1072_s6] sm:$0xff] }
   0x9   :  { %734 = vmatpush3.msra.mxu0 %v34_v4  ;;  %237 = vmatprep.subr.mxu1 %v184_v10  ;;  %v917_v17 = vld [vmem:[%s1066_s0] sm:$0xff]  ;;  %v191_v3 = vsub.s32 0, %v190_v2  ;;  %v195_v4 = vsub.s32 1, %v190_v2  ;;  %p805_p3 = por %p804_p2, %p803_p1 }
   0xa   :  { %736 = vmatmul.mubr.msk.f32.vlgmr.msra.gmra.mxu0 %vm45_vm0, %v31_v5  ;;  %238 = vmatpush1.msra.mxu1 %v183_v11  ;;  %v550_v18 = vld [vmem:[%s1067_s1] sm:$0xff]  ;;  %vm304_vm11 = vcmp.ne.s32.totalorder %v917_v17, 4294967196 }
   0xb   :  { %738 = vmatprep.mubr.msk.f32.mxu0 %vm45_vm0, %v32_v6  ;;  %239 = vmatprep.subr.mxu1 %v182_v13  ;;  %v696_v20 = vld [vmem:[%s1071_s5] ss:$0 sm:$0xff]  ;;  %p806_p4 = pnand %p805_p3, %p799_p0 }
   0xc   :  { %240 = vmatpush1.msra.mxu1 %v181_v14  ;;  %756 = vset.pattern.permute.xlu0 %v813_v19  ;;  %v187_v5 = vld [vmem:[%s1073_s7] sm:$0x3] }
   0xd   :  { %241 = vmatprep.subr.mxu1 %v180_v15  ;;  %320 = vperm.xlu1 %757, %v917_v17   ;;  %v192_v6 = vrot.slane %v187_v5, %v191_v3 }
   0xe   :  { %739 = vmatmul.mubr.msk.f32.gmra.mxu0 %vm45_vm0, %v33_v7  ;;  %242 = vmatpush1.msra.mxu1 %v179_v16  ;;  %v196_v7 = vrot.slane %v187_v5, %v195_v4 }
   0xf   :  { %624 = vmatprep.mubr.f32.mxu0 %v812_v12  ;;  %552 = vperm.xlu0 %756, %v550_v18  }
  0xca   :  { %v737_v21 = vpop.f32.mrf.mxu0 }
  0xcb   :  { %v130_v22 = vadd.f32 %v737_v21, %v696_v20 }
  0xcc   :  { %v124_v23 = vpop.f32.mrf.mxu0 }
  0xcd   :  { %v144_v24 = vmul.f32 %v130_v22, %v130_v22  ;;  %v125_v25 = vadd.f32 %v696_v20, %v124_v23 }
  0xce   :  { %v740_v26 = vpop.f32.mrf.mxu0 }
  0xcf   :  { %v148_v27 = vmul.f32 %v144_v24, %v130_v22  ;;  %v143_v28 = vmul.f32 %v125_v25, %v125_v25  ;;  %v140_v29 = vadd.f32 %v740_v26, %v696_v20 }
  0xd0   :  { %v134_v30 = vpop.f32.mrf.mxu0 }
  0xd1   :  { %v152_v31 = vmul.f32 0.044715, %v148_v27  ;;  %v147_v32 = vmul.f32 %v143_v28, %v125_v25  ;;  %v146_v33 = vmul.f32 %v140_v29, %v140_v29  ;;  %v135_v34 = vadd.f32 %v696_v20, %v134_v30 }
  0xd2   :  { %v958_v30 = vand.u32 127, %v189_v1 }
  0xd3   :  { %v156_v35 = vadd.f32 %v152_v31, %v130_v22  ;;  %v151_v36 = vmul.f32 0.044715, %v147_v32  ;;  %v150_v37 = vmul.f32 %v146_v33, %v140_v29  ;;  %v145_v38 = vmul.f32 %v135_v34, %v135_v34  ;;  %v976_v33 = vld [vmem:[%s1066_s0 + $0x18] sm:$0xff] }
  0xd4   :  { %vm307_vm13 = vcmp.ne.s32.totalorder %v976_v33, 4294967196 }
  0xd5   :  { %v160_v39 = vmul.f32 0.7978846, %v156_v35  ;;  %v155_v40 = vadd.f32 %v151_v36, %v125_v25  ;;  %v154_v41 = vmul.f32 0.044715, %v150_v37  ;;  %v149_v42 = vmul.f32 %v145_v38, %v135_v34  ;;  %v988_v35 = vld [vmem:[%s1066_s0 + $0x10] sm:$0xff]  ;;  %v321_v36 = vpop.permute.xlu1 %320 }
  0xd6   :  { %vm331_vm5 = vcmp.eq.s32.totalorder %v958_v30, %v321_v36  ;;  %vm306_vm10 = vcmp.ne.s32.totalorder %v988_v35, 4294967196 }
  0xd7   :  { %758 = vtanh.f32 %v160_v39  ;;  %v159_v43 = vmul.f32 0.7978846, %v155_v40  ;;  %v158_v44 = vadd.f32 %v154_v41, %v140_v29  ;;  %v153_v45 = vmul.f32 0.044715, %v149_v42 }
  0xd9   :  { %760 = vtanh.f32 %v159_v43  ;;  %v157_v46 = vadd.f32 %v153_v45, %v135_v34  ;;  %v162_v47 = vmul.f32 0.7978846, %v158_v44 }
  0xdb   :  { %v161_v48 = vmul.f32 0.7978846, %v157_v46 }
  0xdd   :  { %762 = vtanh.f32 %v161_v48 }
  0xde   :  { %764 = vtanh.f32 %v162_v47 }
  0xe4   :  { %v759_v49 = vpop.eup %758 }
  0xe5   :  { %v168_v52 = vadd.f32 1.0, %v759_v49 }
  0xe6   :  { %v761_v50 = vpop.eup %760 }
  0xe7   :  { %v167_v51 = vadd.f32 1.0, %v761_v50  ;;  %v172_v56 = vmul.f32 0.5, %v168_v52 }
  0xe9   :  { %v171_v53 = vmul.f32 0.5, %v167_v51  ;;  %v176_v59 = vmul.f32 %v172_v56, %v130_v22 }
  0xea   :  { %v763_v54 = vpop.eup %762 }
  0xeb   :  { %v175_v55 = vmul.f32 %v171_v53, %v125_v25  ;;  %v169_v57 = vadd.f32 1.0, %v763_v54  ;;  %v765_v58 = vpop.eup %764 }
  0xec   :  { %v170_v61 = vadd.f32 1.0, %v765_v58 }
  0xed   :  { %701 = vmatmul.mubr.msk.f32.vlgmr.msra.gmra.mxu1 %vm45_vm0, %v175_v55  ;;  %v173_v60 = vmul.f32 0.5, %v169_v57 }
  0xee   :  { %281 = vmatprep.mubr.f32.mxu1 %v812_v12  ;;  %v174_v63 = vmul.f32 0.5, %v170_v61 }
  0xef   :  { %v177_v62 = vmul.f32 %v173_v60, %v135_v34  ;;  %v982_v34 = vld [vmem:[%s1066_s0 + $0x8] sm:$0xff]  ;;  %v318_v60 = vadd.s32 128, %v958_v30 }
  0xf0   :  { %v178_v0 = vmul.f32 %v174_v63, %v140_v29  ;;  %v553_v29 = vpop.permute.xlu0 %552  ;;  %vm305_vm12 = vcmp.ne.s32.totalorder %v982_v34, 4294967196 }
  0xf1   :  { %702 = vmatmul.mubr.msk.f32.gmra.mxu1 %vm45_vm0, %v176_v59  ;;  %vm554_vm1 = vcmp.eq.s32.totalorder %v958_v30, %v553_v29  ;;  %vm332_vm4 = vcmp.eq.s32.totalorder %v318_v60, %v321_v36 }
  0xf2   :  { %287 = vmatprep.mubr.f32.mxu1 %v812_v12  ;;  %v717_v32 = vsel %vm554_vm1, 1.0, %v812_v12  ;;  %vm667_vm1 = vcmask 1024  }
  0xf5   :  { %703 = vmatmul.mubr.msk.f32.gmra.mxu1 %vm45_vm0, %v177_v62 }
  0xf6   :  { %293 = vmatprep.mubr.f32.mxu1 %v812_v12 }
  0xf9   :  { %704 = vmatmul.mubr.msk.f32.gmra.mxu1 %vm45_vm0, %v178_v0 }
 0x1ad   :  { %v277_v8 = vpop.f32.mrf.mxu1 }
 0x1ae   :  { %v936_v10 = vadd.f32 %v277_v8, %v192_v6 }
 0x1af   :  { %v279_v9 = vpop.f32.mrf.mxu1 }
 0x1b0   :  { %v938_v11 = vadd.f32 %v279_v9, %v196_v7 }
 0x1b1   :  { %v283_v13 = vpop.f32.mrf.mxu1 }
 0x1b2   :  { %v355_v14 = vmax.f32 %v936_v10, %v938_v11  ;;  %v942_v16 = vadd.f32 %v283_v13, %v192_v6  ;;  %v710_v13 = vsel %vm332_vm4, 1.0, %v812_v12 }
 0x1b3   :  { %v285_v15 = vpop.f32.mrf.mxu1 }
 0x1b4   :  { %v944_v18 = vadd.f32 %v285_v15, %v196_v7  ;;  %356 = vmax.xlane.f32.xlu0 %v355_v14 }
 0x1b5   :  { %v289_v19 = vpop.f32.mrf.mxu1 }
 0x1b6   :  { %v358_v20 = vmax.f32 %v942_v16, %v944_v18  ;;  %v948_v22 = vadd.f32 %v289_v19, %v192_v6  ;;  %v709_v19 = vsel %vm331_vm5, 1.0, %v812_v12 }
 0x1b7   :  { %v291_v21 = vpop.f32.mrf.mxu1 }
 0x1b8   :  { %v950_v23 = vadd.f32 %v291_v21, %v196_v7  ;;  %359 = vmax.xlane.f32.xlu1 %v358_v20 }
 0x1b9   :  { %v295_v24 = vpop.f32.mrf.mxu1 }
 0x1ba   :  { %v361_v25 = vmax.f32 %v948_v22, %v950_v23  ;;  %v954_v27 = vadd.f32 %v295_v24, %v192_v6 }
 0x1bb   :  { %v297_v26 = vpop.f32.mrf.mxu1 }
 0x1bc   :  { %v956_v28 = vadd.f32 %v297_v26, %v196_v7  ;;  %362 = vmax.xlane.f32.xlu1 %v361_v25  ;;  %v415_v25 = vmul.f32 %v709_v19, %v936_v10 }
 0x1be   :  { %584 = vmatprep.subr.mxu0 %v956_v28  ;;  %v364_v31 = vmax.f32 %v954_v27, %v956_v28 }
 0x1bf   :  { %585 = vmatpush1.msra.mxu0 %v954_v27 }
 0x1c0   :  { %586 = vmatprep.subr.mxu0 %v950_v23  ;;  %365 = vmax.xlane.f32.xlu1 %v364_v31 }
 0x1c1   :  { %587 = vmatpush1.msra.mxu0 %v948_v22 }
 0x1c2   :  { %588 = vmatprep.subr.mxu0 %v944_v18 }
 0x1c3   :  { %589 = vmatpush1.msra.mxu0 %v942_v16 }
 0x1c4   :  { %590 = vmatprep.subr.mxu0 %v938_v11 }
 0x1c5   :  { %591 = vmatpush1.msra.mxu0 %v936_v10 }
 0x1c6   :  { %718 = vmatmul.mubr.msk.f32.vlgmr.msra.gmra.mxu0 %vm45_vm0, %v717_v32 }
 0x1ca   :  { %329 = vperm.xlu0 %756, %v976_v33  }
 0x1d1   :  { %323 = vperm.xlu1 %757, %v982_v34  }
 0x1d5   :  { %326 = vperm.xlu1 %757, %v988_v35   ;;  %v708_v35 = vsel %vm307_vm13, 1.0, %v812_v12 }
 0x1d6   :  { %v485_v33 = vmul.f32 0.0, %v708_v35 }
 0x23d   :  { %v991_v37 = vpop.xlane.xlu0 %356 }
 0x23e   :  { %v367_v38 = vsub.f32 %v936_v10, %v991_v37  ;;  %v368_v39 = vsub.f32 %v938_v11, %v991_v37  ;;  %v707_v10 = vsel %vm306_vm10, 1.0, %v812_v12 }
 0x240   :  { %v375_v40 = vmul.f32 1.442695, %v367_v38  ;;  %v377_v41 = vmul.f32 1.442695, %v368_v39 }
 0x241   :  { %v997_v42 = vpop.xlane.xlu1 %359 }
 0x242   :  { %766 = vpow2.f32 %v375_v40  ;;  %v369_v43 = vsub.f32 %v942_v16, %v997_v42  ;;  %v370_v44 = vsub.f32 %v944_v18, %v997_v42 }
 0x243   :  { %768 = vpow2.f32 %v377_v41 }
 0x244   :  { %v379_v45 = vmul.f32 1.442695, %v369_v43  ;;  %v381_v46 = vmul.f32 1.442695, %v370_v44 }
 0x245   :  { %v1003_v47 = vpop.xlane.xlu1 %362  ;;  %v330_v20 = vpop.permute.xlu0 %329 }
 0x246   :  { %770 = vpow2.f32 %v379_v45  ;;  %v371_v48 = vsub.f32 %v948_v22, %v1003_v47  ;;  %v372_v49 = vsub.f32 %v950_v23, %v1003_v47  ;;  %vm337_vm8 = vcmp.eq.s32.totalorder %v958_v30, %v330_v20 }
 0x247   :  { %772 = vpow2.f32 %v381_v46  ;;  %vm338_vm9 = vcmp.eq.s32.totalorder %v318_v60, %v330_v20  ;;  %v715_v32 = vsel %vm337_vm8, 1.0, %v812_v12 }
 0x248   :  { %v383_v50 = vmul.f32 1.442695, %v371_v48  ;;  %v385_v51 = vmul.f32 1.442695, %v372_v49  ;;  %v716_v36 = vsel %vm338_vm9, 1.0, %v812_v12  ;;  %v421_v38 = vmul.f32 %v715_v32, %v954_v27 }
 0x249   :  { %v1009_v52 = vpop.xlane.xlu1 %365  ;;  %v422_v39 = vmul.f32 %v716_v36, %v956_v28 }
 0x24a   :  { %774 = vpow2.f32 %v383_v50  ;;  %v373_v53 = vsub.f32 %v954_v27, %v1009_v52  ;;  %v374_v54 = vsub.f32 %v956_v28, %v1009_v52  ;;  %v484_v28 = vmul.f32 0.0, %v707_v10 }
 0x24b   :  { %776 = vpow2.f32 %v385_v51 }
 0x24c   :  { %v387_v55 = vmul.f32 1.442695, %v373_v53  ;;  %v389_v56 = vmul.f32 1.442695, %v374_v54  ;;  %v489_v46 = vsel %vm464_vm14, %v484_v28, 0.0  ;;  %v491_v53 = vsel %vm464_vm14, %v485_v33, 0.0 }
 0x24d   :  { %v324_v57 = vpop.permute.xlu1 %323  ;;  %v524_v54 = vsel %vm464_vm14, %v707_v10, 0.0 }
 0x24e   :  { %778 = vpow2.f32 %v387_v55  ;;  %vm333_vm6 = vcmp.eq.s32.totalorder %v958_v30, %v324_v57  ;;  %vm334_vm7 = vcmp.eq.s32.totalorder %v318_v60, %v324_v57  ;;  %v526_v57 = vsel %vm464_vm14, %v708_v35, 0.0 }
 0x24f   :  { %v767_v58 = vpop.eup %766  ;;  %780 = vpow2.f32 %v389_v56  ;;  %v712_v24 = vsel %vm334_vm7, 1.0, %v812_v12 }
 0x250   :  { %v769_v59 = vpop.eup %768  ;;  %v418_v31 = vmul.f32 %v712_v24, %v944_v18  ;;  %v706_v18 = vsel %vm305_vm12, 1.0, %v812_v12 }
 0x251   :  { %v327_v61 = vpop.permute.xlu1 %326  ;;  %v391_v62 = vadd.f32 %v769_v59, %v767_v58  ;;  %v487_v40 = vsel %vm464_vm14, %v706_v18, 0.0 }
 0x252   :  { %vm335_vm2 = vcmp.eq.s32.totalorder %v958_v30, %v327_v61  ;;  %vm336_vm3 = vcmp.eq.s32.totalorder %v318_v60, %v327_v61  ;;  %v432_v30 = vadd.f32 %v422_v39, %v421_v38 }
 0x253   :  { %v771_v63 = vpop.eup %770  ;;  %v713_v0 = vsel %vm335_vm2, 1.0, %v812_v12  ;;  %v714_v1 = vsel %vm336_vm3, 1.0, %v812_v12  ;;  %392 = vadd.xlane.f32.xlu1 %v391_v62 }
 0x254   :  { %v773_v2 = vpop.eup %772  ;;  %v419_v4 = vmul.f32 %v713_v0, %v948_v22  ;;  %v420_v5 = vmul.f32 %v714_v1, %v950_v23  ;;  %v416_v22 = vmul.f32 %v710_v13, %v938_v11  ;;  %v711_v23 = vsel %vm333_vm6, 1.0, %v812_v12 }
 0x255   :  { %v394_v3 = vadd.f32 %v773_v2, %v771_v63  ;;  %v417_v29 = vmul.f32 %v711_v23, %v942_v16  ;;  %v705_v16 = vsel %vm304_vm11, 1.0, %v812_v12 }
 0x256   :  { %v429_v8 = vadd.f32 %v420_v5, %v419_v4  ;;  %v423_v26 = vadd.f32 %v416_v22, %v415_v25  ;;  %v486_v27 = vsel %vm464_vm14, %v705_v16, 0.0 }
 0x257   :  { %v775_v6 = vpop.eup %774  ;;  %395 = vadd.xlane.f32.xlu0 %v394_v3  ;;  %v426_v11 = vadd.f32 %v418_v31, %v417_v29  ;;  %v488_v34 = vadd.f32 %v487_v40, %v486_v27 }
 0x258   :  { %v777_v7 = vpop.eup %776 }
 0x259   :  { %v397_v9 = vadd.f32 %v777_v7, %v775_v6  ;;  %v490_v50 = vadd.f32 %v489_v46, %v488_v34  ;;  %v525_v56 = vadd.f32 %v524_v54, %v488_v34 }
 0x25b   :  { %v779_v14 = vpop.eup %778  ;;  %430 = vadd.xlane.f32.xlu0 %v429_v8  ;;  %398 = vadd.xlane.f32.xlu1 %v397_v9  ;;  %v492_v12 = vadd.f32 %v491_v53, %v490_v50  ;;  %v527_v58 = vadd.f32 %v526_v57, %v525_v56 }
 0x25c   :  { %v781_v15 = vpop.eup %780 }
 0x25d   :  { %v400_v21 = vadd.f32 %v781_v15, %v779_v14 }
 0x25f   :  { %401 = vadd.xlane.f32.xlu1 %v400_v21 }
 0x263   :  { %424 = vadd.xlane.f32.xlu1 %v423_v26 }
 0x267   :  { %427 = vadd.xlane.f32.xlu1 %v426_v11 }
 0x26b   :  { %433 = vadd.xlane.f32.xlu1 %v432_v30 }
 0x286   :  { %v626_v41 = vpop.f32.mrf.mxu0 }
 0x287   :  { %v633_v17 = vrot.slane %v626_v41, 4 }
 0x288   :  { %v628_v43 = vpop.f32.mrf.mxu0 }
 0x289   :  { %v637_v44 = vmul.f32 %v633_v17, %v626_v41  ;;  %v634_v45 = vrot.slane %v628_v43, 4 }
 0x28b   :  { %v638_v48 = vmul.f32 %v634_v45, %v628_v43  ;;  %v640_v49 = vsel %vm639_vm15, %v637_v44, 0.0  ;;  %v649_v45 = vld [vmem:[%s1068_s2] sm:$0x3] }
 0x28d   :  { %v641_v51 = vsel %vm639_vm15, %v638_v48, 0.0 }
 0x28e   :  { %v642_v55 = vadd.f32 %v641_v51, %v640_v49 }
 0x290   :  { %643 = vadd.xlane.f32.xlu0 %v642_v55 }
 0x294   :  { %493 = vadd.xlane.f32.xlu0 %v492_v12 }
 0x298   :  { %528 = vadd.xlane.f32.xlu0 %v527_v58 }
 0x2dc   :  { %v393_v59 = vpop.xlane.xlu1 %392 }
 0x2dd   :  { %782 = vlog2.f32 %v393_v59 }
 0x2e0   :  { %v396_v60 = vpop.xlane.xlu0 %395 }
 0x2e1   :  { %784 = vlog2.f32 %v396_v60 }
 0x2e4   :  { %v399_v61 = vpop.xlane.xlu1 %398  ;;  %v431_v19 = vpop.xlane.xlu0 %430 }
 0x2e5   :  { %786 = vlog2.f32 %v399_v61 }
 0x2e8   :  { %v402_v62 = vpop.xlane.xlu1 %401 }
 0x2e9   :  { %788 = vlog2.f32 %v402_v62 }
 0x2ea   :  { %v783_v63 = vpop.eup %782 }
 0x2eb   :  { %v404_v1 = vmul.f32 0.6931472, %v783_v63 }
 0x2ec   :  { %v425_v0 = vpop.xlane.xlu1 %424 }
 0x2ed   :  { %v411_v4 = vadd.f32 %v404_v1, %v991_v37 }
 0x2ee   :  { %v785_v2 = vpop.eup %784 }
 0x2ef   :  { %v406_v3 = vmul.f32 0.6931472, %v785_v2  ;;  %v435_v14 = vsub.f32 %v411_v4, %v425_v0 }
 0x2f0   :  { %v428_v7 = vpop.xlane.xlu1 %427 }
 0x2f1   :  { %v412_v5 = vadd.f32 %v406_v3, %v997_v42  ;;  %v439_v24 = vmul.f32 %v705_v16, %v435_v14 }
 0x2f2   :  { %v787_v6 = vpop.eup %786 }
 0x2f3   :  { %v408_v8 = vmul.f32 0.6931472, %v787_v6  ;;  %v436_v9 = vsub.f32 %v412_v5, %v428_v7  ;;  %v465_v31 = vsel %vm464_vm14, %v439_v24, 0.0 }
 0x2f4   :  { %v434_v26 = vpop.xlane.xlu1 %433 }
 0x2f5   :  { %v413_v13 = vadd.f32 %v408_v8, %v1003_v47  ;;  %v440_v22 = vmul.f32 %v706_v18, %v436_v9 }
 0x2f6   :  { %v789_v15 = vpop.eup %788 }
 0x2f7   :  { %v437_v20 = vsub.f32 %v413_v13, %v431_v19  ;;  %v410_v21 = vmul.f32 0.6931472, %v789_v15  ;;  %v466_v42 = vsel %vm464_vm14, %v440_v22, 0.0 }
 0x2f8   :  { %v467_v36 = vadd.f32 %v466_v42, %v465_v31 }
 0x2f9   :  { %v441_v23 = vmul.f32 %v707_v10, %v437_v20  ;;  %v414_v25 = vadd.f32 %v410_v21, %v1009_v52 }
 0x2fb   :  { %v462_v37 = vmul.f32 0.0, %v441_v23  ;;  %v438_v29 = vsub.f32 %v414_v25, %v434_v26  ;;  %v506_v30 = vsel %vm464_vm14, %v441_v23, 0.0 }
 0x2fc   :  { %v507_v16 = vadd.f32 %v506_v30, %v467_v36 }
 0x2fd   :  { %v442_v32 = vmul.f32 %v708_v35, %v438_v29  ;;  %v468_v47 = vsel %vm464_vm14, %v462_v37, 0.0 }
 0x2fe   :  { %v469_v38 = vadd.f32 %v468_v47, %v467_v36 }
 0x2ff   :  { %v463_v11 = vmul.f32 0.0, %v442_v32  ;;  %v508_v52 = vsel %vm464_vm14, %v442_v32, 0.0 }
 0x300   :  { %v509_v18 = vadd.f32 %v508_v52, %v507_v16 }
 0x301   :  { %v470_v39 = vsel %vm464_vm14, %v463_v11, 0.0 }
 0x302   :  { %v471_v10 = vadd.f32 %v470_v39, %v469_v38 }
 0x304   :  { %472 = vadd.xlane.f32.xlu1 %v471_v10 }
 0x308   :  { %510 = vadd.xlane.f32.xlu1 %v509_v18 }
 0x319   :  { %v644_v27 = vpop.xlane.xlu0 %643 }
 0x31a   :  { %v646_v28 = vrot.slane %v644_v27, 2 }
 0x31c   :  { %v648_v40 = vadd.f32 %v646_v28, %v644_v27 }
 0x31d   :  { %v494_v57 = vpop.xlane.xlu0 %493 }
 0x31e   :  { %v653_v35 = vand.u32 2147483647, %v648_v40  ;;  %v650_v46 = vmax.f32 %v648_v40, 0.0  ;;  %v651_v48 = vmul.f32 %v649_v45, %v648_v40  ;;  %v495_v58 = vrot.slane %v494_v57, 4 }
 0x320   :  { %v654_v41 = vsub.f32 0.0, %v653_v35  ;;  %v652_v54 = vsub.f32 %v650_v46, %v651_v48  ;;  %v496_v60 = vadd.f32 %v495_v58, %v494_v57 }
 0x321   :  { %v529_v59 = vpop.xlane.xlu0 %528 }
 0x322   :  { %v655_v17 = vmul.f32 1.442695, %v654_v41  ;;  %v530_v61 = vrot.slane %v529_v59, 4  ;;  %v497_v62 = vrot.slane %v496_v60, 2 }
 0x324   :  { %790 = vpow2.f32 %v655_v17  ;;  %v531_v63 = vadd.f32 %v530_v61, %v529_v59  ;;  %v498_v5 = vadd.f32 %v497_v62, %v496_v60 }
 0x326   :  { %v532_v3 = vrot.slane %v531_v63, 2  ;;  %v499_v14 = vrot.slane %v498_v5, 1 }
 0x328   :  { %v533_v13 = vadd.f32 %v532_v3, %v531_v63  ;;  %v500_v22 = vadd.f32 %v499_v14, %v498_v5 }
 0x32a   :  { %v534_v23 = vrot.slane %v533_v13, 1 }
 0x32c   :  { %v535_v26 = vadd.f32 %v534_v23, %v533_v13 }
 0x331   :  { %v791_v43 = vpop.eup %790 }
 0x332   :  { %v657_v34 = vadd.f32 1.0, %v791_v43  ;;  %v660_v44 = vmul.f32 -0.5, %v791_v43  ;;  %v663_v49 = vand.u32 2147483647, %v791_v43 }
 0x334   :  { %792 = vlog2.f32 %v657_v34  ;;  %v661_v33 = vadd.f32 1.0, %v660_v44  ;;  %vm664_vm0 = vcmp.lt.f32.partialorder %v663_v49, 0.0004427343 }
 0x336   :  { %v662_v53 = vmul.f32 %v791_v43, %v661_v33 }
 0x341   :  { %v793_v50 = vpop.eup %792 }
 0x342   :  { %v659_v51 = vmul.f32 0.6931472, %v793_v50 }
 0x344   :  { %v665_v55 = vsel %vm664_vm0, %v662_v53, %v659_v51 }
 0x345   :  { %v666_v12 = vadd.f32 %v665_v55, %v652_v54 }
 0x347   :  { %v668_v56 = vsel %vm667_vm1, %v666_v12, 0.0 }
 0x348   :  { %669 = vadd.xlane.f32.xlu1 %v668_v56 }
 0x38d   :  { %v473_v0 = vpop.xlane.xlu1 %472 }
 0x38e   :  { %v474_v1 = vrot.slane %v473_v0, 4 }
 0x390   :  { %v475_v2 = vadd.f32 %v474_v1, %v473_v0 }
 0x391   :  { %v511_v4 = vpop.xlane.xlu1 %510 }
 0x392   :  { %v476_v6 = vrot.slane %v475_v2, 2  ;;  %v512_v7 = vrot.slane %v511_v4, 4 }
 0x394   :  { %v513_v8 = vadd.f32 %v512_v7, %v511_v4  ;;  %v477_v9 = vadd.f32 %v476_v6, %v475_v2 }
 0x396   :  { %v514_v15 = vrot.slane %v513_v8, 2  ;;  %v478_v19 = vrot.slane %v477_v9, 1 }
 0x398   :  { %v479_v20 = vadd.f32 %v478_v19, %v477_v9  ;;  %v515_v21 = vadd.f32 %v514_v15, %v513_v8 }
 0x39a   :  { %741 = vpush %v479_v20  ;;  %v516_v24 = vrot.slane %v515_v21, 1 }
 0x39b   :  { %743 = vpush %v500_v22 }
 0x39c   :  { %v517_v25 = vadd.f32 %v516_v24, %v515_v21 }
 0x39e   :  { %745 = vpush %v517_v25 }
 0x39f   :  { %747 = vpush %v535_v26 }
 0x3cb   :  { %s742_s2 = spop %741 }
 0x3cc   :  { %s744_s23 = spop %743  ;;  %v481_v52 = vstv %s742_s2 }
 0x3cd   :  { %v502_v37 = vstv %s744_s23 }
 0x3ce   :  { %v539_v42 = vmax.f32 %v502_v37, 1.0 }
 0x3cf   :  { %s746_s24 = spop %745 }
 0x3d0   :  { %s748_s25 = spop %747  ;;  %794 = vrcp.f32 %v539_v42  ;;  %v519_v39 = vstv %s746_s24 }
 0x3d1   :  { %v537_v29 = vstv %s748_s25  ;;  %v670_v31 = vpop.xlane.xlu1 %669  ;;  %v520_v16 = vsub.f32 %v519_v39, %v481_v52 }
 0x3d2   :  { %v538_v32 = vsub.f32 %v537_v29, %v502_v37  ;;  %v671_v47 = vrot.slane %v670_v31, 4 }
 0x3d4   :  { %v542_v36 = vmax.f32 %v538_v32, 1.0  ;;  %v672_v11 = vadd.f32 %v671_v47, %v670_v31 }
 0x3d6   :  { %796 = vrcp.f32 %v542_v36  ;;  %v673_v38 = vrot.slane %v672_v11, 2 }
 0x3d8   :  { %v674_v30 = vadd.f32 %v673_v38, %v672_v11 }
 0x3da   :  { %v675_v27 = vrot.slane %v674_v30, 1 }
 0x3dc   :  { %v676_v41 = vadd.f32 %v675_v27, %v674_v30 }
 0x3dd   :  { %v795_v10 = vpop.eup %794 }
 0x3de   :  { %v541_v28 = vmul.f32 %v795_v10, %v481_v52 }
 0x3e3   :  { %v797_v18 = vpop.eup %796 }
 0x3e4   :  { %v544_v40 = vmul.f32 %v797_v18, %v520_v16 }
 0x3e6   :  { %v545_v35 = vadd.f32 %v544_v40, %v541_v28 }
 0x3e8   :  { %749 = vpush %v545_v35 }
 0x3e9   :  { %751 = vpush %v676_v41 }
 0x419   :  { %s750_s28 = spop %749 }
 0x41a   :  { %549 = sst [smem:[#allocation2]] %s750_s28  ;;  %s752_s29 = spop %751 }
 0x41b   :  { %s678_s30 = smul.f32 0.5, %s752_s29 }
 0x41d   :  { %680 = sst [smem:[#allocation2 + $0x1]] %s678_s30 }
 0x41e   :  { %809 = shalt.err (!%p806_p4)
}
 0x41f   :  { %s814_s10 = smov [#allocation2]  }
 0x420   :  { %690 = dma.smem_to_vmem %s814_s10, 16, %s688_s3, [#allocation3]  }
 0x421   :  { %810 = dma.done.wait [#allocation3], 16  }
 0x422   :  { %811 = vsyncadd [#allocation3], 4294967280 }
 0x423   :  { %694 = sfence }
 0x424   :  { %695 = vsyncpa [#allocation3], 1 }

</bundles_post_ra>
